<compile_context>
chip_gen: v6e
topology: v6e:2x2x1
jax: 0.10.0
libtpu: 0.0.40
codegen_flags: <defaults>
</compile_context>

<pallas_src>
import math

import jax
import jax.numpy as jnp
from jax import lax
from jax.experimental import pallas as pl
from jax.experimental.pallas import tpu as pltpu

PAD = 0  # stand-in for consts.PAD (padding row is zero-initialized, like nn.Embedding)


def _round_up(x: int, m: int) -> int:
    return (x + m - 1) // m * m


def _vmem_capacity_bytes() -> int:
    """Generation-aware VMEM size (v5e/v6e: 128 MiB, v7x: 64 MiB)."""
    try:
        cap = getattr(pltpu.get_tpu_info(), "vmem_capacity_bytes", None)
        if cap:
            return int(cap)
    except Exception:
        pass
    kind = ""
    try:
        kind = jax.devices()[0].device_kind.lower()
    except Exception:
        pass
    if "v7" in kind:
        return 64 * 1024 * 1024
    return 128 * 1024 * 1024  # v5e / v6e


def _onehot_kernel(tq: int, vocab_size: int, scale: float):
    """Table resident in VMEM; gather = one-hot (TQ,V) x table (V,E) on the MXU."""

    def kernel(ids_ref, w_ref, out_ref):
        ids = ids_ref[...]                                        # (tq, 1) int32
        iota = lax.broadcasted_iota(jnp.int32, (tq, vocab_size), 1)
        onehot = (iota == ids).astype(w_ref.dtype)                # exact 0.0 / 1.0
        gathered = jnp.dot(onehot, w_ref[...],
                           preferred_element_type=jnp.float32,
                           precision=lax.Precision.HIGHEST)       # exact row gather
        out_ref[...] = (gathered * scale).astype(out_ref.dtype)

    return kernel


def _streamed_kernel(tq: int, scale: float, num_tiles: int):
    """Table in HBM; double-buffered per-row gather DMAs (manual P4 pipeline)."""

    def kernel(tok_sref, w_hbm, out_ref, buf, sem):
        i = pl.program_id(0)
        slot = i % 2

        def issue_tile(tile_idx, dst_slot):
            base = tile_idx * tq

            def issue(j, carry):
                tok = tok_sref[base + j]                          # SMEM scalar read
                pltpu.make_async_copy(
                    w_hbm.at[pl.ds(tok, 1), :],
                    buf.at[dst_slot, pl.ds(j, 1), :],
                    sem.at[dst_slot],
                ).start()
                return carry

            # unroll=8 lets the scheduler co-issue the SMEM id load, address
            # math and the 1-per-bundle DMA descriptor push.
            lax.fori_loop(0, tq, issue, 0, unroll=8)

        # Prologue: prime slot 0 with tile 0's rows.
        @pl.when(i == 0)
        def _():
            issue_tile(0, 0)

        # Prefetch the NEXT tile into the other slot BEFORE draining this one:
        # it targets the other buffer/semaphore (previous step fully drained
        # it), so the whole issue loop hides behind the in-flight DMAs.
        @pl.when(i + 1 < num_tiles)
        def _():
            issue_tile(i + 1, 1 - slot)

        # Single aggregated wait: all tq row copies of this slot signal the same
        # DMA semaphore, and every row copy has identical byte size, so one wait
        # sized as the full (tq, E) slot == tq row-sized waits.  Do NOT change
        # the per-row copy shape without revisiting this.
        pltpu.make_async_copy(buf.at[slot], buf.at[slot], sem.at[slot]).wait()

        out_ref[...] = buf[slot] * scale

    return kernel


def token_embedding(tokens: jax.Array, weight: jax.Array, *,
                    tile_tokens: int = 512, onehot_max_vocab: int = 2048,
                    force_streamed: bool = False) -> jax.Array:
    """Pallas equivalent of TokenEmbedding.forward: weight[tokens] * sqrt(E)."""
    d1, d2 = tokens.shape
    vocab_size, emb_size = weight.shape
    n = d1 * d2
    scale = float(math.sqrt(emb_size))
    itemsize = jnp.dtype(weight.dtype).itemsize

    # Clamp ids: an out-of-range id would otherwise become an OOB data-dependent
    # access.  (nn.Embedding would raise; clamping is a documented divergence.)
    flat_ids = jnp.clip(tokens.reshape(-1).astype(jnp.int32), 0, vocab_size - 1)

    # Tokens per grid step: multiple of 8 (sublane-dense f32 stores), capped so
    # one (tq, E) tile stays <= ~2 MiB (keeps the resident gate open on v7x's
    # 64 MiB VMEM); 128+ rows already amortizes the ~0.35 us per-step overhead.
    cap_rows = max(8, ((2 << 20) // max(1, emb_size * itemsize)) // 8 * 8)
    tq = max(8, min(_round_up(tile_tokens, 8), cap_rows, _round_up(n, 8)))
    n_pad = _round_up(n, tq)
    if n_pad != n:
        flat_ids = jnp.pad(flat_ids, (0, n_pad - n), constant_values=PAD)
    num_tiles = n_pad // tq

    table_bytes = vocab_size * emb_size * itemsize
    tile_out_bytes = tq * emb_size * itemsize
    vmem_cap = _vmem_capacity_bytes()
    vmem_budget = int(0.9 * vmem_cap)

    # Resident/one-hot gate accounts for BlockSpec double-buffering (2x table,
    # 2x out tile, 2x ids tile) plus the transient (tq, V) one-hot + headroom.
    # TODO(synk): pipeline_mode=pl.Buffered(1) on the table spec would drop the
    # 2x table term (constant index map never refetches the block).
    resident_need = (2 * table_bytes + 2 * tile_out_bytes + 2 * tq * 4
                     + tq * vocab_size * 4 + (2 << 20))
    use_onehot = ((not force_streamed)
                  and vocab_size <= onehot_max_vocab
                  and resident_need <= vmem_budget)

    out_shape = jax.ShapeDtypeStruct((n_pad, emb_size), weight.dtype)

    if use_onehot:
        vmem_limit = min(vmem_budget, max(32 << 20, resident_need))
        cost = pl.CostEstimate(
            flops=2 * n_pad * vocab_size * emb_size,
            transcendentals=0,
            bytes_accessed=table_bytes + n_pad * 4 + n_pad * emb_size * itemsize,
        )
        out_flat = pl.pallas_call(
            _onehot_kernel(tq, vocab_size, scale),
            out_shape=out_shape,
            grid=(num_tiles,),
            in_specs=[
                pl.BlockSpec((tq, 1), lambda i: (i, 0)),                 # ids tile
                pl.BlockSpec((vocab_size, emb_size), lambda i: (0, 0)),  # whole table
            ],
            out_specs=pl.BlockSpec((tq, emb_size), lambda i: (i, 0)),
            compiler_params=pltpu.CompilerParams(
                dimension_semantics=("parallel",),   # tiles independent (v7x: 2 TCs)
                vmem_limit_bytes=vmem_limit,
            ),
            cost_estimate=cost,
        )(flat_ids.reshape(n_pad, 1), weight)
    else:
        streamed_need = 2 * tq * emb_size * itemsize + 2 * tile_out_bytes + (2 << 20)
        vmem_limit = min(vmem_budget, max(32 << 20, 2 * streamed_need))
        cost = pl.CostEstimate(
            flops=n_pad * emb_size,
            transcendentals=0,
            bytes_accessed=n_pad * 4 + 2 * n_pad * emb_size * itemsize,
        )
        # TODO(synk): whole-sequence scalar prefetch pads SMEM to next_pow2(4*n_pad)
        # bytes -- chunk the call at the wrapper for n >~ 256K tokens.
        # TODO(synk): on v7x, shard tiles across the 2 TensorCores with a
        # (2, num_tiles//2) grid ("parallel", "arbitrary"); this path is
        # DMA-issue bound, so that is ~2x there.
        out_flat = pl.pallas_call(
            _streamed_kernel(tq, scale, num_tiles),
            out_shape=out_shape,
            grid_spec=pltpu.PrefetchScalarGridSpec(
                num_scalar_prefetch=1,
                grid=(num_tiles,),
                in_specs=[pl.BlockSpec(memory_space=pl.ANY)],  # table stays in HBM
                out_specs=pl.BlockSpec((tq, emb_size), lambda i, tok: (i, 0)),
                scratch_shapes=[
                    pltpu.VMEM((2, tq, emb_size), weight.dtype),  # double buffer
                    pltpu.SemaphoreType.DMA((2,)),
                ],
            ),
            compiler_params=pltpu.CompilerParams(
                # Sequential: double-buffer slot state is carried across steps.
                dimension_semantics=("arbitrary",),
                vmem_limit_bytes=vmem_limit,
            ),
            cost_estimate=cost,
        )(flat_ids, weight)

    if n_pad != n:
        out_flat = out_flat[:n]
    return out_flat.reshape(d1, d2, emb_size)


def make_embedding_weight(key, vocab_size: int, emb_size: int) -> jax.Array:
    """Deterministic nn.Embedding-style init: N(0,1), padding row zeroed."""
    w = jax.random.normal(key, (vocab_size, emb_size), dtype=jnp.float32)
    w = w.at[PAD].set(0.0)
    return w


if __name__ == "__main__":
    vocab_size = 32
    emb_size = 128     # lane-aligned embedding dim
    batch, seq = 2, 8  # tokens shape (dim1, dim2)

    key = jax.random.PRNGKey(0)
    k_w, k_t = jax.random.split(key)

    weight = make_embedding_weight(k_w, vocab_size, emb_size)
    tokens = jax.random.randint(k_t, (batch, seq), 0, vocab_size, dtype=jnp.int32)

    # Reference (plain JAX gather).
    ref = weight[tokens.reshape(-1)].reshape(batch, seq, emb_size) * math.sqrt(emb_size)

    # Fast path: VMEM-resident table, one-hot MXU gather.
    out = jax.block_until_ready(token_embedding(tokens, weight))
    assert out.shape == (batch, seq, emb_size)
    assert jnp.allclose(out, ref, atol=1e-4, rtol=1e-5), "one-hot resident path mismatch"

    # Fallback path: double-buffered HBM row-gather DMA (used for big tables).
    out_s = jax.block_until_ready(token_embedding(tokens, weight, force_streamed=True))
    assert jnp.allclose(out_s, ref, atol=1e-4, rtol=1e-5), "streamed path mismatch"

    print("KERNEL_OK")
</pallas_src>

<mosaic_0001>
module attributes {stable_mosaic.version = 11 : i64} {
  func.func @kernel(%arg0: i32, %arg1: memref<16x1xi32, #tpu.memory_space<vmem>>, %arg2: memref<32x128xf32, #tpu.memory_space<vmem>>, %arg3: memref<16x128xf32, #tpu.memory_space<vmem>>) attributes {dimension_semantics = [#tpu.dimension_semantics<parallel>], iteration_bounds = array<i64: 1>, scalar_prefetch = 0 : i64, scratch_operands = 0 : i64, tpu.core_type = #tpu.core_type<tc>, window_params = [{transform_indices = @transform_0, window_bounds = array<i64: 16, 1>}, {pipeline_mode = #tpu.pipeline_mode<synchronous>, transform_indices = @transform_1, window_bounds = array<i64: 32, 128>}, {transform_indices = @transform_2, window_bounds = array<i64: 16, 128>}]} {
    %c0 = arith.constant 0 : index
    %c0_0 = arith.constant 0 : index
    %0 = vector.load %arg1[%c0, %c0_0] : memref<16x1xi32, #tpu.memory_space<vmem>>, vector<16x1xi32>
    %1 = tpu.iota {dimensions = array<i32: 1>} : vector<16x32xi32>
    %2 = vector.broadcast %0 : vector<16x1xi32> to vector<16x32xi32>
    %3 = arith.cmpi eq, %1, %2 : vector<16x32xi32>
    %4 = arith.extui %3 : vector<16x32xi1> to vector<16x32xi32>
    %5 = arith.sitofp %4 : vector<16x32xi32> to vector<16x32xf32>
    %c0_1 = arith.constant 0 : index
    %c0_2 = arith.constant 0 : index
    %6 = vector.load %arg2[%c0_1, %c0_2] : memref<32x128xf32, #tpu.memory_space<vmem>>, vector<32x128xf32>
    %cst = arith.constant dense<0.000000e+00> : vector<16x128xf32>
    %7 = tpu.matmul %5, %6, %cst {dimension_numbers = #tpu.dot_dimension_numbers<[1], [0], [0], [1], [0, 0, 1, 1], [], []>, precision = #tpu.contract_precision<fp32>} : vector<16x32xf32>, vector<32x128xf32>, vector<16x128xf32> -> vector<16x128xf32>
    %cst_3 = arith.constant 11.3137083 : f32
    %8 = vector.broadcast %cst_3 : f32 to vector<16x128xf32>
    %9 = arith.mulf %7, %8 : vector<16x128xf32>
    %c0_4 = arith.constant 0 : index
    %c0_5 = arith.constant 0 : index
    %10 = vector.load %arg3[%c0_4, %c0_5] : memref<16x128xf32, #tpu.memory_space<vmem>>, vector<16x128xf32>
    tpu.vector_store %arg3[%c0_4, %c0_5], %9 {strides = array<i32>} : memref<16x128xf32, #tpu.memory_space<vmem>>, vector<16x128xf32>,
    return
  }
  func.func @transform_0(%arg0: i32) -> (i32, i32) {
    %c0_i32 = arith.constant 0 : i32
    %c0_i32_0 = arith.constant 0 : i32
    return %arg0, %c0_i32 : i32, i32
  }
  func.func @transform_1(%arg0: i32) -> (i32, i32) {
    %c0_i32 = arith.constant 0 : i32
    %c0_i32_0 = arith.constant 0 : i32
    %c0_i32_1 = arith.constant 0 : i32
    return %c0_i32, %c0_i32_0 : i32, i32
  }
  func.func @transform_2(%arg0: i32) -> (i32, i32) {
    %c0_i32 = arith.constant 0 : i32
    %c0_i32_0 = arith.constant 0 : i32
    return %arg0, %c0_i32 : i32, i32
  }
}

</mosaic_0001>

<bundles_post_ra>
// kernel: tpu_custom_call.1
= control target key start
LH: loop header
LB: loop body
LE: loop exit
PB: predicated region body
PF: predicated region fallthrough
CT: control target
= control target key end

     0   :  { %7 = vsyncpa [#allocation3], 0  ;;  %s890_s0 = inlined_call_operand.vmem [shape: s32[16,1], index: 0, kind: input, shape index: {}]   ;;  %s891_s1 = inlined_call_operand.hbm [shape: f32[32,128], index: 1, kind: input, shape index: {}]   ;;  %s892_s2 = inlined_call_operand.hbm [shape: f32[16,128], index: 2, kind: output, shape index: {}]  }
   0x1   :  { %8 = vsyncpa [#allocation4], 0  ;;  %s763_s9 = smov [#allocation2]  }
   0x2   :  { %s16_s10 = sshll.u32 %s763_s9, 4  ;;  %s17_s10 = int_to_ptr.vmem [resolvable:$true] %s16_s10 }
   0x3   :  { %s727_s11 = scalar_lea.vmem %s17_s10, 512  ;;  %p732_p1 = scmp.lt.s32.totalorder %s17_s10, %s17_s10 }
   0x4   :  { %p728_p0 = scmp.ne.s32.totalorder %s17_s10, %s727_s11  ;;  %p733_p2 = scmp.lt.s32.totalorder %s727_s11, %s727_s11 }
   0x6   :  { %p734_p3 = por %p733_p2, %p732_p1 }
   0x8   :  { %p735_p4 = pnand %p734_p3, %p728_p0 }
   0xa   :  { %738 = shalt.err (!%p735_p4)
}
   0xb   :  { %s764_s12 = smov 128   ;;  %s765_s13 = smov 8  }
   0xc   :  { %22 = dma.hbm_to_vmem [thread:$0]  %s891_s1, 512, %s17_s10, [#allocation3], %s764_s12, %s764_s12, %s765_s13  }
   0xd   :  { %759 = dma.done.wait [#allocation3], 512  }
   0xe   :  { %760 = vsyncadd [#allocation3], 4294966784  ;;  %v766_v0 = vmov 0   ;;  %v26_v1 = vld [vmem:[%s890_s0] sm:$0xff]  ;;  %v45_v2 = vld [vmem:[#allocation2 + $0x18] sm:$0xff]  ;;  %v28_v27 = vlaneseq  ;;  %vm46_vm0 = vcmask 261120  }
   0xf   :  { %718 = vset.pattern.permute.xlu0 %v766_v0  ;;  %v793_v3 = vand.u32 4294901760, %v45_v2  ;;  %v44_v4 = vld [vmem:[#allocation2 + $0x10] sm:$0xff]  ;;  %v43_v5 = vld [vmem:[#allocation2 + $0x8] sm:$0xff]  ;;  %v42_v6 = vld [vmem:[#allocation2] sm:$0xff]  ;;  %v767_v30 = vmov 0.0  }
  0x10   :  { %31 = vperm.xlu0 %718, %v26_v1   ;;  %v27_v7 = vld [vmem:[%s890_s0 + $0x8] sm:$0xff]  ;;  %v798_v8 = vand.u32 4294901760, %v44_v4  ;;  %v800_v9 = vand.u32 4294901760, %v43_v5  ;;  %v802_v10 = vand.u32 4294901760, %v42_v6  ;;  %v29_v28 = vand.u32 127, %v28_v27  ;;  %s768_s0 = smov [#allocation5]  }
  0x11   :  { %v805_v11 = vsub.f32 %v45_v2, %v793_v3  ;;  %646 = vmatprep.subr.mxu0 %v793_v3  ;;  %s590_s1 = sshll.u32 %s768_s0, 4  ;;  %s591_s1 = int_to_ptr.vmem [resolvable:$true] %s590_s1 }
  0x12   :  { %v809_v12 = vsub.f32 %v44_v4, %v798_v8  ;;  %v812_v13 = vsub.f32 %v43_v5, %v800_v9  ;;  %v815_v14 = vsub.f32 %v42_v6, %v802_v10  ;;  %647 = vmatpush3.msra.mxu0 %v793_v3  ;;  %s739_s20 = scalar_lea.vmem %s591_s1, 256  ;;  %p744_p6 = scmp.lt.s32.totalorder %s591_s1, %s591_s1 }
  0x13   :  { %v819_v15 = vand.u32 4294901760, %v805_v11  ;;  %648 = vmatprep.subr.mxu0 %v798_v8  ;;  %p740_p5 = scmp.ne.s32.totalorder %s591_s1, %s739_s20  ;;  %p745_p7 = scmp.lt.s32.totalorder %s739_s20, %s739_s20 }
  0x14   :  { %34 = vperm.xlu0 %718, %v27_v7   ;;  %v823_v16 = vand.u32 4294901760, %v809_v12  ;;  %v826_v17 = vand.u32 4294901760, %v812_v13  ;;  %v829_v18 = vand.u32 4294901760, %v815_v14  ;;  %649 = vmatpush3.msra.mxu0 %v798_v8 }
  0x15   :  { %v170_v19 = vsub.f32 %v805_v11, %v819_v15  ;;  %650 = vmatprep.subr.mxu0 %v800_v9  ;;  %p746_p8 = por %p745_p7, %p744_p6 }
  0x16   :  { %v177_v20 = vsub.f32 %v809_v12, %v823_v16  ;;  %v184_v21 = vsub.f32 %v812_v13, %v826_v17  ;;  %651 = vmatpush3.msra.mxu0 %v800_v9  ;;  %v191_v23 = vsub.f32 %v815_v14, %v829_v18 }
  0x17   :  { %v171_v22 = vand.u32 4294901760, %v170_v19  ;;  %652 = vmatprep.subr.mxu0 %v802_v10  ;;  %p747_p9 = pnand %p746_p8, %p740_p5 }
  0x18   :  { %v178_v24 = vand.u32 4294901760, %v177_v20  ;;  %653 = vmatpush3.msra.mxu0 %v802_v10  ;;  %v185_v25 = vand.u32 4294901760, %v184_v21  ;;  %v192_v26 = vand.u32 4294901760, %v191_v23 }
  0x19   :  { %657 = vmatprep.subr.mxu1 %v171_v22  ;;  %668 = vmatprep.subr.mxu0 %v805_v11 }
  0x1a   :  { %658 = vmatpush3.msra.mxu1 %v171_v22 }
  0x1b   :  { %659 = vmatprep.subr.mxu1 %v178_v24 }
  0x1c   :  { %660 = vmatpush3.msra.mxu1 %v178_v24 }
  0x1d   :  { %661 = vmatprep.subr.mxu1 %v185_v25 }
  0x1e   :  { %662 = vmatpush3.msra.mxu1 %v185_v25 }
  0x1f   :  { %663 = vmatprep.subr.mxu1 %v192_v26 }
  0x20   :  { %664 = vmatpush3.msra.mxu1 %v192_v26 }
  0x21   :  { %679 = vmatprep.subr.mxu1 %v793_v3 }
  0x8b   :  { %v32_v29 = vpop.permute.xlu0 %31 }
  0x8c   :  { %vm36_vm1 = vcmp.eq.s32.totalorder %v29_v28, %v32_v29 }
  0x8d   :  { %v602_v31 = vsel %vm36_vm1, 1.0, %v767_v30 }
  0x8e   :  { %v48_v32 = vsel %vm46_vm0, %v602_v31, 0  ;;  %665 = vmatprep.mubr.msk.f32.mxu1 %vm46_vm0, %v602_v31 }
  0x8f   :  { %v123_v33 = vsub.f32 %v48_v32, %v48_v32  ;;  %v35_v34 = vpop.permute.xlu0 %34 }
  0x90   :  { %vm37_vm2 = vcmp.eq.s32.totalorder %v29_v28, %v35_v34 }
  0x91   :  { %v603_v35 = vsel %vm37_vm2, 1.0, %v767_v30  ;;  %v124_v36 = vand.u32 4294901760, %v123_v33 }
  0x92   :  { %v51_v37 = vsel %vm46_vm0, %v603_v35, 0  ;;  %666 = vmatmul.mubr.msk.f32.vlgmr.msra.gmra.mxu1 %vm46_vm0, %v603_v35 }
  0x93   :  { %v133_v38 = vsub.f32 %v51_v37, %v51_v37  ;;  %680 = vmatpush3.msra.mxu1 %v793_v3  ;;  %687 = vmatprep.mubr.f32.mxu1 %v124_v36  ;;  %v125_v39 = vsub.f32 %v123_v33, %v124_v36 }
  0x94   :  { %681 = vmatprep.subr.mxu1 %v798_v8 }
  0x95   :  { %682 = vmatpush3.msra.mxu1 %v798_v8  ;;  %v126_v40 = vand.u32 4294901760, %v125_v39  ;;  %v134_v41 = vand.u32 4294901760, %v133_v38 }
  0x96   :  { %683 = vmatprep.subr.mxu1 %v800_v9 }
  0x97   :  { %684 = vmatpush3.msra.mxu1 %v800_v9  ;;  %654 = vmatprep.mubr.f32.mxu0 %v126_v40  ;;  %v135_v42 = vsub.f32 %v133_v38, %v134_v41 }
  0x98   :  { %685 = vmatprep.subr.mxu1 %v802_v10 }
  0x99   :  { %686 = vmatpush3.msra.mxu1 %v802_v10  ;;  %v136_v43 = vand.u32 4294901760, %v135_v42 }
  0x9a   :  { %688 = vmatmul.mubr.f32.vlgmr.msra.gmra.mxu1 %v134_v41  ;;  %701 = vmatprep.subr.mxu1 %v793_v3 }
  0x9b   :  { %702 = vmatpush3.msra.mxu1 %v793_v3  ;;  %709 = vmatprep.mubr.msk.f32.mxu1 %vm46_vm0, %v602_v31 }
  0x9c   :  { %655 = vmatmul.mubr.f32.vlgmr.msra.gmra.mxu0 %v136_v43  ;;  %703 = vmatprep.subr.mxu1 %v798_v8 }
  0x9d   :  { %669 = vmatpush3.msra.mxu0 %v805_v11  ;;  %676 = vmatprep.mubr.f32.mxu0 %v123_v33 }
  0x9e   :  { %670 = vmatprep.subr.mxu0 %v809_v12  ;;  %704 = vmatpush3.msra.mxu1 %v798_v8 }
  0x9f   :  { %671 = vmatpush3.msra.mxu0 %v809_v12  ;;  %705 = vmatprep.subr.mxu1 %v800_v9 }
  0xa0   :  { %672 = vmatprep.subr.mxu0 %v812_v13  ;;  %706 = vmatpush3.msra.mxu1 %v800_v9 }
  0xa1   :  { %673 = vmatpush3.msra.mxu0 %v812_v13  ;;  %707 = vmatprep.subr.mxu1 %v802_v10 }
  0xa2   :  { %674 = vmatprep.subr.mxu0 %v815_v14  ;;  %708 = vmatpush3.msra.mxu1 %v802_v10 }
  0xa3   :  { %675 = vmatpush3.msra.mxu0 %v815_v14  ;;  %710 = vmatmul.mubr.msk.f32.vlgmr.msra.gmra.mxu1 %vm46_vm0, %v603_v35 }
  0xa4   :  { %677 = vmatmul.mubr.f32.vlgmr.msra.gmra.mxu0 %v133_v38  ;;  %690 = vmatprep.subr.mxu0 %v819_v15 }
  0xa5   :  { %691 = vmatpush3.msra.mxu0 %v819_v15  ;;  %698 = vmatprep.mubr.msk.f32.mxu0 %vm46_vm0, %v602_v31 }
  0xa6   :  { %692 = vmatprep.subr.mxu0 %v823_v16 }
  0xa7   :  { %693 = vmatpush3.msra.mxu0 %v823_v16 }
  0xa8   :  { %694 = vmatprep.subr.mxu0 %v826_v17 }
  0xa9   :  { %695 = vmatpush3.msra.mxu0 %v826_v17 }
  0xaa   :  { %696 = vmatprep.subr.mxu0 %v829_v18 }
  0xab   :  { %697 = vmatpush3.msra.mxu0 %v829_v18 }
  0xac   :  { %699 = vmatmul.mubr.msk.f32.vlgmr.msra.gmra.mxu0 %vm46_vm0, %v603_v35 }
 0x152   :  { %v667_v45 = vpop.f32.mrf.mxu1 }
 0x154   :  { %v229_v47 = vpop.f32.mrf.mxu1 }
 0x15a   :  { %v689_v50 = vpop.f32.mrf.mxu1 }
 0x15c   :  { %v656_v44 = vpop.f32.mrf.mxu0  ;;  %v399_v55 = vpop.f32.mrf.mxu1 }
 0x15d   :  { %v236_v49 = vadd.f32 %v667_v45, %v656_v44 }
 0x15e   :  { %v128_v46 = vpop.f32.mrf.mxu0 }
 0x15f   :  { %v230_v52 = vadd.f32 %v229_v47, %v128_v46 }
 0x163   :  { %v711_v57 = vpop.f32.mrf.mxu1 }
 0x164   :  { %v678_v48 = vpop.f32.mrf.mxu0 }
 0x165   :  { %v323_v53 = vadd.f32 %v678_v48, %v236_v49  ;;  %v571_v0 = vpop.f32.mrf.mxu1 }
 0x166   :  { %v315_v51 = vpop.f32.mrf.mxu0 }
 0x167   :  { %v316_v54 = vadd.f32 %v315_v51, %v230_v52  ;;  %v408_v56 = vadd.f32 %v689_v50, %v323_v53 }
 0x169   :  { %v400_v60 = vadd.f32 %v399_v55, %v316_v54 }
 0x16c   :  { %v700_v58 = vpop.f32.mrf.mxu0 }
 0x16d   :  { %v497_v59 = vadd.f32 %v700_v58, %v408_v56 }
 0x16e   :  { %v490_v61 = vpop.f32.mrf.mxu0 }
 0x16f   :  { %v578_v62 = vadd.f32 %v711_v57, %v497_v59  ;;  %v491_v63 = vadd.f32 %v490_v61, %v400_v60 }
 0x171   :  { %v582_v1 = vmul.f32 11.313708, %v578_v62  ;;  %v572_v2 = vadd.f32 %v571_v0, %v491_v63 }
 0x173   :  { %584 = vst [vmem:[#allocation5 + $0x8] sm:$0xff] %v582_v1  ;;  %v581_v3 = vmul.f32 11.313708, %v572_v2 }
 0x175   :  { %583 = vst [vmem:[#allocation5] sm:$0xff] %v581_v3 }
 0x176   :  { %750 = shalt.err (!%p747_p9)
}
 0x177   :  { %596 = dma.vmem_to_hbm [thread:$0]  %s591_s1, 256, %s892_s2, [#allocation4], %s764_s12, %s764_s12, %s765_s13  }
 0x178   :  { %761 = dma.done.wait [#allocation4], 256  }
 0x179   :  { %762 = vsyncadd [#allocation4], 4294967040 }
 0x17a   :  { %600 = vsyncpa [#allocation3], 1 }
 0x17b   :  { %601 = vsyncpa [#allocation4], 1 }

</bundles_post_ra>
